<compile_context>
chip_gen: v6e
topology: v6e:2x2x1
jax: 0.10.0
libtpu: 0.0.40
codegen_flags: <defaults>
</compile_context>

<pallas_src>
import functools

import jax
import jax.numpy as jnp
from jax import lax
from jax.experimental import pallas as pl
from jax.experimental.pallas import tpu as pltpu


def _round_up(x, m):
    return ((x + m - 1) // m) * m


# ---------------------------------------------------------------------------
# Path A: small vocab, table resident in VMEM -> one-hot matmul gather (MXU).
# ---------------------------------------------------------------------------
def _embedding_onehot_kernel(tok_ref, w_ref, o_ref, *, vocab_size):
    # tok_ref: VMEM (T, 1) int32 token ids for this tile
    # w_ref:   VMEM (V, D) embedding table (grid-invariant block)
    # o_ref:   VMEM (T, D) output tile
    ids = tok_ref[...]                                                # (T, 1)
    cols = lax.broadcasted_iota(jnp.int32, (ids.shape[0], vocab_size), 1)
    # Out-of-range ids match no column -> all-zero row; no OOB reads possible.
    onehot = (cols == ids).astype(w_ref.dtype)                        # (T, V)
    o_ref[...] = jnp.dot(onehot, w_ref[...],
                         preferred_element_type=jnp.float32).astype(o_ref.dtype)


# ---------------------------------------------------------------------------
# Path B: large vocab, table stays in HBM -> pipelined per-row DMA gather.
# ---------------------------------------------------------------------------
def _embedding_dma_kernel(tok_ref, w_hbm, o_ref, sem, *,
                          tokens_per_block, num_slots, vocab_size):
    # tok_ref: SMEM (N_pad,) int32 token ids (scalar-prefetched)
    # w_hbm:   HBM  (V, D) embedding table (memory_space=pl.ANY, no auto-DMA)
    # o_ref:   VMEM (T, D) output tile; rows are DMA'd straight into it
    # sem:     DMA semaphores -> num_slots row copies kept in flight
    i = pl.program_id(0)
    base = i * tokens_per_block
    n_chunks = tokens_per_block // num_slots

    def row_copy(t, idx, s):
        return pltpu.make_async_copy(
            w_hbm.at[pl.ds(idx, 1)],      # (1, D) row in HBM
            o_ref.at[pl.ds(t, 1)],        # (1, D) row of the output tile
            sem.at[s])

    def chunk(c, carry):
        t0 = c * num_slots
        for s in range(num_slots):                     # static unroll: issue
            t = t0 + s
            idx = tok_ref[base + t]
            idx = jnp.clip(idx, 0, vocab_size - 1)     # no unchecked HBM reads
            row_copy(t, idx, s).start()
        for s in range(num_slots):                     # static unroll: drain
            t = t0 + s
            row_copy(t, 0, s).wait()
        return carry

    lax.fori_loop(0, n_chunks, chunk, 0)


def embedding_lookup(tokens, weight, *, tokens_per_block=512, num_dma_slots=8,
                     max_onehot_vocab=2048, force_path=None):
    """Pallas embedding lookup: tokens (...,) int -> (..., D) in weight.dtype."""
    V, D = weight.shape
    itemsize = jnp.dtype(weight.dtype).itemsize

    flat_tok = tokens.reshape(-1).astype(jnp.int32)
    N = flat_tok.shape[0]

    # Big, sublane-aligned tiles (512 is also MXU/256-friendly on v6e/v7x);
    # shrink for tiny inputs so the demo does not do 32x padded work.
    T = _round_up(min(tokens_per_block, _round_up(N, 8)), 8)
    N_pad = _round_up(N, T)
    if N_pad != N:
        # Pad ids gather row 0; the padded output rows are sliced off below.
        flat_tok = jnp.pad(flat_tok, (0, N_pad - N))
    grid = (N_pad // T,)

    # Resident/one-hot path only when the (double-buffered) table, the (T, V)
    # one-hot intermediate and the output tiles comfortably fit VMEM
    # (<= ~40 MiB keeps headroom even on v7x's 64 MiB VMEM).
    resident_need = (2 * V * D * itemsize + 2 * T * D * itemsize
                     + T * V * 4 + 2 * T * 4)
    use_onehot = (V <= max_onehot_vocab) and (resident_need <= 40 * 2**20)
    if force_path == "dma":
        use_onehot = False
    elif force_path == "onehot":
        use_onehot = True

    out_shape = jax.ShapeDtypeStruct((N_pad, D), weight.dtype)

    if use_onehot:
        kernel = functools.partial(_embedding_onehot_kernel, vocab_size=V)
        vmem_limit = int(min(64 * 2**20,
                             max(32 * 2**20, resident_need + (4 << 20))))
        out_flat = pl.pallas_call(
            kernel,
            out_shape=out_shape,
            grid_spec=pltpu.PrefetchScalarGridSpec(
                num_scalar_prefetch=0,
                grid=grid,
                in_specs=[
                    pl.BlockSpec((T, 1), lambda i: (i, 0)),    # token ids
                    pl.BlockSpec((V, D), lambda i: (0, 0)),    # full table (invariant)
                ],
                out_specs=pl.BlockSpec((T, D), lambda i: (i, 0)),
            ),
            compiler_params=pltpu.CompilerParams(
                dimension_semantics=("parallel",),
                vmem_limit_bytes=vmem_limit),
        )(flat_tok.reshape(N_pad, 1), weight)
    else:
        num_slots = max(1, min(num_dma_slots, T))
        while T % num_slots:
            num_slots -= 1
        kernel = functools.partial(
            _embedding_dma_kernel, tokens_per_block=T, num_slots=num_slots,
            vocab_size=V)
        out_flat = pl.pallas_call(
            kernel,
            out_shape=out_shape,
            grid_spec=pltpu.PrefetchScalarGridSpec(
                num_scalar_prefetch=1,                         # token ids -> SMEM
                grid=grid,
                in_specs=[pl.BlockSpec(memory_space=pl.ANY)],  # table stays in HBM
                out_specs=pl.BlockSpec((T, D), lambda i, tok: (i, 0)),
                scratch_shapes=[pltpu.SemaphoreType.DMA((num_slots,))],
            ),
            compiler_params=pltpu.CompilerParams(
                dimension_semantics=("parallel",)),
        )(flat_tok, weight)

    return out_flat[:N].reshape(*tokens.shape, D)


def make_embedding_weight(key, vocab_size, embedding_dim, padding_idx=None,
                          dtype=jnp.float32):
    """Deterministic init mirroring nn.Embedding: N(0,1) rows, padding row zeroed."""
    w = jax.random.normal(key, (vocab_size, embedding_dim), dtype=dtype)
    if padding_idx is not None:
        w = w.at[padding_idx].set(0.0)
    return w


if __name__ == "__main__":
    key = jax.random.PRNGKey(0)
    k_w, k_tok = jax.random.split(key)

    vocab_size = 64
    embedding_dim = 128
    padding_idx = 0
    B, S = 2, 8

    weight = make_embedding_weight(k_w, vocab_size, embedding_dim, padding_idx)
    tokens = jax.random.randint(k_tok, (B, S), 0, vocab_size, dtype=jnp.int32)
    # make sure the padding index actually appears
    tokens = tokens.at[0, 0].set(padding_idx)

    ref = weight[tokens]  # plain-JAX gather == torch nn.Embedding forward

    # Path A: VMEM-resident table, one-hot MXU gather (auto-selected: V is tiny).
    out = jax.block_until_ready(embedding_lookup(tokens, weight))
    assert out.shape == (B, S, embedding_dim)
    assert out.dtype == weight.dtype
    assert jnp.allclose(out, ref), "one-hot path mismatch vs reference gather"
    assert jnp.allclose(out[0, 0], 0.0), "padding_idx row should be zero"

    # Path B: HBM table + pipelined DMA row gather (forced, to validate the
    # large-vocab path on the same small inputs).
    out_dma = jax.block_until_ready(
        embedding_lookup(tokens, weight, force_path="dma"))
    assert jnp.allclose(out_dma, ref), "DMA path mismatch vs reference gather"

    print("KERNEL_OK")
</pallas_src>

<mosaic_0001>
module attributes {stable_mosaic.version = 11 : i64} {
  func.func @_embedding_onehot_kernel(%arg0: i32, %arg1: memref<16x1xi32, #tpu.memory_space<vmem>>, %arg2: memref<64x128xf32, #tpu.memory_space<vmem>>, %arg3: memref<16x128xf32, #tpu.memory_space<vmem>>) attributes {dimension_semantics = [#tpu.dimension_semantics<parallel>], iteration_bounds = array<i64: 1>, scalar_prefetch = 0 : i64, scratch_operands = 0 : i64, tpu.core_type = #tpu.core_type<tc>, window_params = [{transform_indices = @transform_0, window_bounds = array<i64: 16, 1>}, {pipeline_mode = #tpu.pipeline_mode<synchronous>, transform_indices = @transform_1, window_bounds = array<i64: 64, 128>}, {transform_indices = @transform_2, window_bounds = array<i64: 16, 128>}]} {
    %c0 = arith.constant 0 : index
    %c0_0 = arith.constant 0 : index
    %0 = vector.load %arg1[%c0, %c0_0] : memref<16x1xi32, #tpu.memory_space<vmem>>, vector<16x1xi32>
    %1 = tpu.iota {dimensions = array<i32: 1>} : vector<16x64xi32>
    %2 = vector.broadcast %0 : vector<16x1xi32> to vector<16x64xi32>
    %3 = arith.cmpi eq, %1, %2 : vector<16x64xi32>
    %4 = arith.extui %3 : vector<16x64xi1> to vector<16x64xi32>
    %5 = arith.sitofp %4 : vector<16x64xi32> to vector<16x64xf32>
    %c0_1 = arith.constant 0 : index
    %c0_2 = arith.constant 0 : index
    %6 = vector.load %arg2[%c0_1, %c0_2] : memref<64x128xf32, #tpu.memory_space<vmem>>, vector<64x128xf32>
    %cst = arith.constant dense<0.000000e+00> : vector<16x128xf32>
    %7 = tpu.matmul %5, %6, %cst {dimension_numbers = #tpu.dot_dimension_numbers<[1], [0], [0], [1], [0, 0, 1, 1], [], []>} : vector<16x64xf32>, vector<64x128xf32>, vector<16x128xf32> -> vector<16x128xf32>
    %c0_3 = arith.constant 0 : index
    %c0_4 = arith.constant 0 : index
    %8 = vector.load %arg3[%c0_3, %c0_4] : memref<16x128xf32, #tpu.memory_space<vmem>>, vector<16x128xf32>
    tpu.vector_store %arg3[%c0_3, %c0_4], %7 {strides = array<i32>} : memref<16x128xf32, #tpu.memory_space<vmem>>, vector<16x128xf32>,
    return
  }
  func.func @transform_0(%arg0: i32) -> (i32, i32) {
    %c0_i32 = arith.constant 0 : i32
    %c0_i32_0 = arith.constant 0 : i32
    return %arg0, %c0_i32 : i32, i32
  }
  func.func @transform_1(%arg0: i32) -> (i32, i32) {
    %c0_i32 = arith.constant 0 : i32
    %c0_i32_0 = arith.constant 0 : i32
    %c0_i32_1 = arith.constant 0 : i32
    return %c0_i32, %c0_i32_0 : i32, i32
  }
  func.func @transform_2(%arg0: i32) -> (i32, i32) {
    %c0_i32 = arith.constant 0 : i32
    %c0_i32_0 = arith.constant 0 : i32
    return %arg0, %c0_i32 : i32, i32
  }
}

</mosaic_0001>

<bundles_post_ra>
// kernel: tpu_custom_call.1
= control target key start
LH: loop header
LB: loop body
LE: loop exit
PB: predicated region body
PF: predicated region fallthrough
CT: control target
= control target key end

     0   :  { %7 = vsyncpa [#allocation3], 0  ;;  %s274_s0 = inlined_call_operand.vmem [shape: s32[16,1], index: 0, kind: input, shape index: {}]   ;;  %s275_s1 = inlined_call_operand.hbm [shape: f32[64,128], index: 1, kind: input, shape index: {}]   ;;  %s276_s2 = inlined_call_operand.hbm [shape: f32[16,128], index: 2, kind: output, shape index: {}]  }
   0x1   :  { %8 = vsyncpa [#allocation4], 0  ;;  %s235_s9 = smov [#allocation2]  }
   0x2   :  { %s16_s10 = sshll.u32 %s235_s9, 4  ;;  %s17_s10 = int_to_ptr.vmem [resolvable:$true] %s16_s10 }
   0x3   :  { %s199_s11 = scalar_lea.vmem %s17_s10, 1024  ;;  %p204_p1 = scmp.lt.s32.totalorder %s17_s10, %s17_s10 }
   0x4   :  { %p200_p0 = scmp.ne.s32.totalorder %s17_s10, %s199_s11  ;;  %p205_p2 = scmp.lt.s32.totalorder %s199_s11, %s199_s11 }
   0x6   :  { %p206_p3 = por %p205_p2, %p204_p1 }
   0x8   :  { %p207_p4 = pnand %p206_p3, %p200_p0 }
   0xa   :  { %210 = shalt.err (!%p207_p4)
}
   0xb   :  { %s236_s12 = smov 128   ;;  %s237_s13 = smov 8  }
   0xc   :  { %22 = dma.hbm_to_vmem [thread:$0]  %s275_s1, 1024, %s17_s10, [#allocation3], %s236_s12, %s236_s12, %s237_s13  }
   0xd   :  { %231 = dma.done.wait [#allocation3], 1024  }
   0xe   :  { %232 = vsyncadd [#allocation3], 4294966272  ;;  %v238_v0 = vmov 0   ;;  %v26_v1 = vld [vmem:[%s274_s0] sm:$0xff]  ;;  %v49_v2 = vld [vmem:[#allocation2 + $0x38] sm:$0xff]  ;;  %v28_v11 = vlaneseq  ;;  %vm50_vm0 = vcmask 523264  }
   0xf   :  { %190 = vset.pattern.permute.xlu0 %v238_v0  ;;  %165 = vmatprep.subr.mxu0 %v49_v2  ;;  %v48_v3 = vld [vmem:[#allocation2 + $0x30] sm:$0xff]  ;;  %v27_v4 = vld [vmem:[%s274_s0 + $0x8] sm:$0xff]  ;;  %v46_v6 = vld [vmem:[#allocation2 + $0x20] sm:$0xff]  ;;  %v239_v14 = vmov 0.0   ;;  %s240_s0 = smov [#allocation5]  }
  0x10   :  { %31 = vperm.xlu0 %190, %v26_v1   ;;  %166 = vmatpush3.msra.mxu0 %v49_v2  ;;  %v47_v5 = vld [vmem:[#allocation2 + $0x28] sm:$0xff]  ;;  %v45_v7 = vld [vmem:[#allocation2 + $0x18] sm:$0xff]  ;;  %v44_v8 = vld [vmem:[#allocation2 + $0x10] sm:$0xff]  ;;  %v29_v12 = vand.u32 127, %v28_v11  ;;  %s139_s1 = sshll.u32 %s240_s0, 4  ;;  %s140_s1 = int_to_ptr.vmem [resolvable:$true] %s139_s1 }
  0x11   :  { %167 = vmatprep.subr.mxu0 %v48_v3  ;;  %v43_v9 = vld [vmem:[#allocation2 + $0x8] sm:$0xff]  ;;  %v42_v10 = vld [vmem:[#allocation2] sm:$0xff]  ;;  %s211_s20 = scalar_lea.vmem %s140_s1, 256  ;;  %p216_p6 = scmp.lt.s32.totalorder %s140_s1, %s140_s1 }
  0x12   :  { %168 = vmatpush3.msra.mxu0 %v48_v3  ;;  %p212_p5 = scmp.ne.s32.totalorder %s140_s1, %s211_s20  ;;  %p217_p7 = scmp.lt.s32.totalorder %s211_s20, %s211_s20 }
  0x13   :  { %169 = vmatprep.subr.mxu0 %v47_v5 }
  0x14   :  { %34 = vperm.xlu0 %190, %v27_v4   ;;  %170 = vmatpush3.msra.mxu0 %v47_v5  ;;  %p218_p8 = por %p217_p7, %p216_p6 }
  0x15   :  { %171 = vmatprep.subr.mxu0 %v46_v6 }
  0x16   :  { %172 = vmatpush3.msra.mxu0 %v46_v6  ;;  %p219_p9 = pnand %p218_p8, %p212_p5 }
  0x17   :  { %173 = vmatprep.subr.mxu0 %v45_v7 }
  0x18   :  { %174 = vmatpush3.msra.mxu0 %v45_v7 }
  0x19   :  { %175 = vmatprep.subr.mxu0 %v44_v8 }
  0x1a   :  { %176 = vmatpush3.msra.mxu0 %v44_v8 }
  0x1b   :  { %177 = vmatprep.subr.mxu0 %v43_v9 }
  0x1c   :  { %178 = vmatpush3.msra.mxu0 %v43_v9 }
  0x1d   :  { %179 = vmatprep.subr.mxu0 %v42_v10 }
  0x1e   :  { %180 = vmatpush3.msra.mxu0 %v42_v10 }
  0x8b   :  { %v32_v13 = vpop.permute.xlu0 %31 }
  0x8c   :  { %vm36_vm1 = vcmp.eq.s32.totalorder %v29_v12, %v32_v13 }
  0x8d   :  { %v151_v15 = vsel %vm36_vm1, 1.0, %v239_v14 }
  0x8e   :  { %181 = vmatprep.mubr.msk.f32.mxu0 %vm50_vm0, %v151_v15 }
  0x8f   :  { %v35_v16 = vpop.permute.xlu0 %34 }
  0x90   :  { %vm37_vm2 = vcmp.eq.s32.totalorder %v29_v12, %v35_v16 }
  0x91   :  { %v152_v17 = vsel %vm37_vm2, 1.0, %v239_v14 }
  0x92   :  { %182 = vmatmul.mubr.msk.f32.vlgmr.msra.gmra.mxu0 %vm50_vm0, %v152_v17 }
 0x152   :  { %v183_v18 = vpop.f32.mrf.mxu0 }
 0x153   :  { %133 = vst [vmem:[#allocation5 + $0x8] sm:$0xff] %v183_v18 }
 0x154   :  { %v123_v19 = vpop.f32.mrf.mxu0 }
 0x155   :  { %132 = vst [vmem:[#allocation5] sm:$0xff] %v123_v19 }
 0x156   :  { %222 = shalt.err (!%p219_p9)
}
 0x157   :  { %145 = dma.vmem_to_hbm [thread:$0]  %s140_s1, 256, %s276_s2, [#allocation4], %s236_s12, %s236_s12, %s237_s13  }
 0x158   :  { %233 = dma.done.wait [#allocation4], 256  }
 0x159   :  { %234 = vsyncadd [#allocation4], 4294967040 }
 0x15a   :  { %149 = vsyncpa [#allocation3], 1 }
 0x15b   :  { %150 = vsyncpa [#allocation4], 1 }

</bundles_post_ra>
